<compile_context>
chip_gen: v7x
topology: tpu7x:2x2x1
jax: 0.10.0
libtpu: 0.0.40
codegen_flags: <defaults>
</compile_context>

<pallas_src>
import functools

import jax
import jax.numpy as jnp
from jax.experimental import pallas as pl
from jax.experimental.pallas import tpu as pltpu

# logical dims (PyTorch module)
D_IN = 400    # 20 * 20
D_H = 100
D_LAT = 25

# lane-aligned padded hidden/latent dims used inside the kernel
P_H = 128
P_LAT = 128


def _round_up(x, m):
    return ((x + m - 1) // m) * m


def _cdiv(a, b):
    return (a + b - 1) // b


def _ae_kernel(x_ref,
               w1_ref, b1_ref, w2_ref, b2_ref,
               w3_ref, b3_ref, w4_ref, b4_ref,
               enc_ref, dec_ref):
    x = x_ref[...]                                   # (block, 400)

    # encoder: tanh(x @ W1 + b1) @ W2 + b2
    h1 = jnp.tanh(
        jnp.dot(x, w1_ref[...], preferred_element_type=jnp.float32) + b1_ref[...]
    )                                                # (block, 128)
    enc_full = (
        jnp.dot(h1, w2_ref[...], preferred_element_type=jnp.float32) + b2_ref[...]
    )                                                # (block, 128), lanes 25.. are 0
    enc_ref[...] = enc_full[:, :D_LAT].astype(enc_ref.dtype)

    # decoder: tanh(tanh(enc @ W3 + b3) @ W4 + b4)
    h2 = jnp.tanh(
        jnp.dot(enc_full, w3_ref[...], preferred_element_type=jnp.float32)
        + b3_ref[...]
    )                                                # (block, 128)
    dec = jnp.tanh(
        jnp.dot(h2, w4_ref[...], preferred_element_type=jnp.float32) + b4_ref[...]
    )                                                # (block, 400)
    dec_ref[...] = dec.astype(dec_ref.dtype)


def pad_params(params):
    """Zero-pad hidden/latent dims of weights/biases to lane multiples.

    W1: (400, 100) -> (400, 128)   (input dim kept at true 400)
    W2: (100, 25)  -> (128, 128)
    W3: (25, 100)  -> (128, 128)
    W4: (100, 400) -> (128, 400)   (output dim kept at true 400)
    Zero padding is exact: padded columns carry zero weights + zero bias, so the
    padded activation lanes are tanh(0)=0 and multiply zero weight rows downstream.
    """
    w1, b1, w2, b2, w3, b3, w4, b4 = params

    def padw(w, pin, pout):
        return jnp.zeros((pin, pout), w.dtype).at[: w.shape[0], : w.shape[1]].set(w)

    def padb(b, pout):
        return jnp.zeros((1, pout), b.dtype).at[:, : b.shape[1]].set(b)

    return (
        padw(w1, D_IN, P_H), padb(b1, P_H),
        padw(w2, P_H, P_LAT), padb(b2, P_LAT),
        padw(w3, P_LAT, P_H), padb(b3, P_H),
        padw(w4, P_H, D_IN), padb(b4, D_IN),
    )


@functools.partial(jax.jit, static_argnames=("block_b",))
def autoencoder_forward(x, padded_params, *, block_b=1024):
    """x: (B, 400) f32 -> (encoded (B, 25), decoded (B, 400))."""
    B = x.shape[0]
    w1, b1, w2, b2, w3, b3, w4, b4 = padded_params

    # Batch tile: large (MXU / per-step-overhead friendly), but capped at
    # ceil(B/2) rounded to 8 so there are >=2 grid steps whenever B allows it
    # (megacore sharding on v7x). Tiny batches shrink to round_up(B, 8).
    block_eff = min(block_b, _round_up(_cdiv(B, 2), 8))
    grid = (_cdiv(B, block_eff),)   # ragged last block handled by Pallas

    # Weights/biases are small (~0.6 MB padded): whole-array blocks with a
    # constant index_map so they stay resident in VMEM across grid steps.
    def whole(shape):
        return pl.BlockSpec(shape, lambda i: (0,) * len(shape))

    in_specs = [
        pl.BlockSpec((block_eff, D_IN), lambda i: (i, 0)),   # x tile, true width
        whole(w1.shape), whole(b1.shape),
        whole(w2.shape), whole(b2.shape),
        whole(w3.shape), whole(b3.shape),
        whole(w4.shape), whole(b4.shape),
    ]
    out_specs = [
        pl.BlockSpec((block_eff, D_LAT), lambda i: (i, 0)),  # 25 == full last dim
        pl.BlockSpec((block_eff, D_IN), lambda i: (i, 0)),   # 400 == full last dim
    ]
    out_shape = [
        jax.ShapeDtypeStruct((B, D_LAT), jnp.float32),
        jax.ShapeDtypeStruct((B, D_IN), jnp.float32),
    ]

    enc, dec = pl.pallas_call(
        _ae_kernel,
        out_shape=out_shape,
        grid_spec=pltpu.PrefetchScalarGridSpec(
            num_scalar_prefetch=0,
            grid=grid,
            in_specs=in_specs,
            out_specs=out_specs,
        ),
        compiler_params=pltpu.CompilerParams(
            dimension_semantics=("parallel",),
            vmem_limit_bytes=32 * 1024 * 1024,
        ),
    )(x, w1, b1, w2, b2, w3, b3, w4, b4)

    return enc, dec


def init_params(key):
    """PyTorch nn.Linear default init U(-1/sqrt(fan_in), 1/sqrt(fan_in)).

    Weights stored as (in, out) (i.e. weight.T); biases as (1, out).
    """
    def linear(k, fan_in, fan_out):
        kw, kb = jax.random.split(k)
        bound = 1.0 / jnp.sqrt(float(fan_in))
        w = jax.random.uniform(kw, (fan_in, fan_out), jnp.float32, -bound, bound)
        b = jax.random.uniform(kb, (1, fan_out), jnp.float32, -bound, bound)
        return w, b

    k1, k2, k3, k4 = jax.random.split(key, 4)
    w1, b1 = linear(k1, D_IN, D_H)     # encoder Linear(400, 100)
    w2, b2 = linear(k2, D_H, D_LAT)    # encoder Linear(100, 25)
    w3, b3 = linear(k3, D_LAT, D_H)    # decoder Linear(25, 100)
    w4, b4 = linear(k4, D_H, D_IN)     # decoder Linear(100, 400)
    return (w1, b1, w2, b2, w3, b3, w4, b4)


def reference_forward(x, params):
    w1, b1, w2, b2, w3, b3, w4, b4 = params
    h1 = jnp.tanh(x @ w1 + b1)
    enc = h1 @ w2 + b2
    h2 = jnp.tanh(enc @ w3 + b3)
    dec = jnp.tanh(h2 @ w4 + b4)
    return enc, dec


if __name__ == "__main__":
    key = jax.random.PRNGKey(0)
    k_params, k_x1, k_x2 = jax.random.split(key, 3)

    params = init_params(k_params)
    padded = pad_params(params)

    # Small smoke test (B=8): single grid step with a shrunken batch tile.
    B = 8
    x = jax.random.normal(k_x1, (B, D_IN), jnp.float32)
    enc, dec = autoencoder_forward(x, padded)
    jax.block_until_ready((enc, dec))
    enc_ref, dec_ref = reference_forward(x, params)
    assert enc.shape == (B, D_LAT) and dec.shape == (B, D_IN)
    assert jnp.allclose(enc, enc_ref, atol=1e-5, rtol=1e-5)
    assert jnp.allclose(dec, dec_ref, atol=1e-5, rtol=1e-5)

    # Larger, odd batch: exercises the 2-step grid, no batch padding, and the
    # ragged (masked) last block.
    B2 = 1001
    x2 = jax.random.normal(k_x2, (B2, D_IN), jnp.float32)
    enc2, dec2 = autoencoder_forward(x2, padded)
    jax.block_until_ready((enc2, dec2))
    enc2_ref, dec2_ref = reference_forward(x2, params)
    assert enc2.shape == (B2, D_LAT) and dec2.shape == (B2, D_IN)
    assert jnp.allclose(enc2, enc2_ref, atol=1e-5, rtol=1e-5)
    assert jnp.allclose(dec2, dec2_ref, atol=1e-5, rtol=1e-5)

    print("KERNEL_OK")
</pallas_src>

<mosaic_0001>
module attributes {stable_mosaic.version = 11 : i64} {
  func.func @_ae_kernel(%arg0: i32, %arg1: memref<8x400xf32, #tpu.memory_space<vmem>>, %arg2: memref<400x128xf32, #tpu.memory_space<vmem>>, %arg3: memref<1x128xf32, #tpu.memory_space<vmem>>, %arg4: memref<128x128xf32, #tpu.memory_space<vmem>>, %arg5: memref<1x128xf32, #tpu.memory_space<vmem>>, %arg6: memref<128x128xf32, #tpu.memory_space<vmem>>, %arg7: memref<1x128xf32, #tpu.memory_space<vmem>>, %arg8: memref<128x400xf32, #tpu.memory_space<vmem>>, %arg9: memref<1x400xf32, #tpu.memory_space<vmem>>, %arg10: memref<8x25xf32, #tpu.memory_space<vmem>>, %arg11: memref<8x400xf32, #tpu.memory_space<vmem>>) attributes {dimension_semantics = [#tpu.dimension_semantics<parallel>], iteration_bounds = array<i64: 1>, scalar_prefetch = 0 : i64, scratch_operands = 0 : i64, tpu.core_type = #tpu.core_type<tc>, window_params = [{transform_indices = @transform_0, window_bounds = array<i64: 8, 400>}, {pipeline_mode = #tpu.pipeline_mode<synchronous>, transform_indices = @transform_1, window_bounds = array<i64: 400, 128>}, {pipeline_mode = #tpu.pipeline_mode<synchronous>, transform_indices = @transform_2, window_bounds = array<i64: 1, 128>}, {pipeline_mode = #tpu.pipeline_mode<synchronous>, transform_indices = @transform_3, window_bounds = array<i64: 128, 128>}, {pipeline_mode = #tpu.pipeline_mode<synchronous>, transform_indices = @transform_4, window_bounds = array<i64: 1, 128>}, {pipeline_mode = #tpu.pipeline_mode<synchronous>, transform_indices = @transform_5, window_bounds = array<i64: 128, 128>}, {pipeline_mode = #tpu.pipeline_mode<synchronous>, transform_indices = @transform_6, window_bounds = array<i64: 1, 128>}, {pipeline_mode = #tpu.pipeline_mode<synchronous>, transform_indices = @transform_7, window_bounds = array<i64: 128, 400>}, {pipeline_mode = #tpu.pipeline_mode<synchronous>, transform_indices = @transform_8, window_bounds = array<i64: 1, 400>}, {transform_indices = @transform_9, window_bounds = array<i64: 8, 25>}, {transform_indices = @transform_10, window_bounds = array<i64: 8, 400>}]} {
    %c0 = arith.constant 0 : index
    %c0_0 = arith.constant 0 : index
    %0 = vector.load %arg1[%c0, %c0_0] : memref<8x400xf32, #tpu.memory_space<vmem>>, vector<8x400xf32>
    %c0_1 = arith.constant 0 : index
    %c0_2 = arith.constant 0 : index
    %1 = vector.load %arg2[%c0_1, %c0_2] : memref<400x128xf32, #tpu.memory_space<vmem>>, vector<400x128xf32>
    %cst = arith.constant dense<0.000000e+00> : vector<8x128xf32>
    %2 = tpu.matmul %0, %1, %cst {dimension_numbers = #tpu.dot_dimension_numbers<[1], [0], [0], [1], [0, 0, 1, 1], [], []>} : vector<8x400xf32>, vector<400x128xf32>, vector<8x128xf32> -> vector<8x128xf32>
    %c0_3 = arith.constant 0 : index
    %c0_4 = arith.constant 0 : index
    %3 = vector.load %arg3[%c0_3, %c0_4] : memref<1x128xf32, #tpu.memory_space<vmem>>, vector<1x128xf32>
    %4 = vector.broadcast %3 : vector<1x128xf32> to vector<8x128xf32>
    %5 = arith.addf %2, %4 : vector<8x128xf32>
    %6 = math.tanh %5 : vector<8x128xf32>
    %c0_5 = arith.constant 0 : index
    %c0_6 = arith.constant 0 : index
    %7 = vector.load %arg4[%c0_5, %c0_6] : memref<128x128xf32, #tpu.memory_space<vmem>>, vector<128x128xf32>
    %cst_7 = arith.constant dense<0.000000e+00> : vector<8x128xf32>
    %8 = tpu.matmul %6, %7, %cst_7 {dimension_numbers = #tpu.dot_dimension_numbers<[1], [0], [0], [1], [0, 0, 1, 1], [], []>} : vector<8x128xf32>, vector<128x128xf32>, vector<8x128xf32> -> vector<8x128xf32>
    %c0_8 = arith.constant 0 : index
    %c0_9 = arith.constant 0 : index
    %9 = vector.load %arg5[%c0_8, %c0_9] : memref<1x128xf32, #tpu.memory_space<vmem>>, vector<1x128xf32>
    %10 = vector.broadcast %9 : vector<1x128xf32> to vector<8x128xf32>
    %11 = arith.addf %8, %10 : vector<8x128xf32>
    %12 = vector.extract_strided_slice %11 {offsets = [0, 0], sizes = [8, 25], strides = [1, 1]} : vector<8x128xf32> to vector<8x25xf32>
    %c0_10 = arith.constant 0 : index
    %c0_11 = arith.constant 0 : index
    %13 = vector.load %arg10[%c0_10, %c0_11] : memref<8x25xf32, #tpu.memory_space<vmem>>, vector<8x25xf32>
    tpu.vector_store %arg10[%c0_10, %c0_11], %12 {strides = array<i32>} : memref<8x25xf32, #tpu.memory_space<vmem>>, vector<8x25xf32>,
    %c0_12 = arith.constant 0 : index
    %c0_13 = arith.constant 0 : index
    %14 = vector.load %arg6[%c0_12, %c0_13] : memref<128x128xf32, #tpu.memory_space<vmem>>, vector<128x128xf32>
    %cst_14 = arith.constant dense<0.000000e+00> : vector<8x128xf32>
    %15 = tpu.matmul %11, %14, %cst_14 {dimension_numbers = #tpu.dot_dimension_numbers<[1], [0], [0], [1], [0, 0, 1, 1], [], []>} : vector<8x128xf32>, vector<128x128xf32>, vector<8x128xf32> -> vector<8x128xf32>
    %c0_15 = arith.constant 0 : index
    %c0_16 = arith.constant 0 : index
    %16 = vector.load %arg7[%c0_15, %c0_16] : memref<1x128xf32, #tpu.memory_space<vmem>>, vector<1x128xf32>
    %17 = vector.broadcast %16 : vector<1x128xf32> to vector<8x128xf32>
    %18 = arith.addf %15, %17 : vector<8x128xf32>
    %19 = math.tanh %18 : vector<8x128xf32>
    %c0_17 = arith.constant 0 : index
    %c0_18 = arith.constant 0 : index
    %20 = vector.load %arg8[%c0_17, %c0_18] : memref<128x400xf32, #tpu.memory_space<vmem>>, vector<128x400xf32>
    %cst_19 = arith.constant dense<0.000000e+00> : vector<8x400xf32>
    %21 = tpu.matmul %19, %20, %cst_19 {dimension_numbers = #tpu.dot_dimension_numbers<[1], [0], [0], [1], [0, 0, 1, 1], [], []>} : vector<8x128xf32>, vector<128x400xf32>, vector<8x400xf32> -> vector<8x400xf32>
    %c0_20 = arith.constant 0 : index
    %c0_21 = arith.constant 0 : index
    %22 = vector.load %arg9[%c0_20, %c0_21] : memref<1x400xf32, #tpu.memory_space<vmem>>, vector<1x400xf32>
    %23 = vector.broadcast %22 : vector<1x400xf32> to vector<8x400xf32>
    %24 = arith.addf %21, %23 : vector<8x400xf32>
    %25 = math.tanh %24 : vector<8x400xf32>
    %c0_22 = arith.constant 0 : index
    %c0_23 = arith.constant 0 : index
    %26 = vector.load %arg11[%c0_22, %c0_23] : memref<8x400xf32, #tpu.memory_space<vmem>>, vector<8x400xf32>
    tpu.vector_store %arg11[%c0_22, %c0_23], %25 {strides = array<i32>} : memref<8x400xf32, #tpu.memory_space<vmem>>, vector<8x400xf32>,
    return
  }
  func.func @transform_0(%arg0: i32) -> (i32, i32) {
    %c0_i32 = arith.constant 0 : i32
    %c0_i32_0 = arith.constant 0 : i32
    return %arg0, %c0_i32 : i32, i32
  }
  func.func @transform_1(%arg0: i32) -> (i32, i32) {
    %c0_i32 = arith.constant 0 : i32
    %c0_i32_0 = arith.constant 0 : i32
    %c0_i32_1 = arith.constant 0 : i32
    return %c0_i32, %c0_i32_0 : i32, i32
  }
  func.func @transform_2(%arg0: i32) -> (i32, i32) {
    %c0_i32 = arith.constant 0 : i32
    %c0_i32_0 = arith.constant 0 : i32
    %c0_i32_1 = arith.constant 0 : i32
    return %c0_i32, %c0_i32_0 : i32, i32
  }
  func.func @transform_3(%arg0: i32) -> (i32, i32) {
    %c0_i32 = arith.constant 0 : i32
    %c0_i32_0 = arith.constant 0 : i32
    %c0_i32_1 = arith.constant 0 : i32
    return %c0_i32, %c0_i32_0 : i32, i32
  }
  func.func @transform_4(%arg0: i32) -> (i32, i32) {
    %c0_i32 = arith.constant 0 : i32
    %c0_i32_0 = arith.constant 0 : i32
    %c0_i32_1 = arith.constant 0 : i32
    return %c0_i32, %c0_i32_0 : i32, i32
  }
  func.func @transform_5(%arg0: i32) -> (i32, i32) {
    %c0_i32 = arith.constant 0 : i32
    %c0_i32_0 = arith.constant 0 : i32
    %c0_i32_1 = arith.constant 0 : i32
    return %c0_i32, %c0_i32_0 : i32, i32
  }
  func.func @transform_6(%arg0: i32) -> (i32, i32) {
    %c0_i32 = arith.constant 0 : i32
    %c0_i32_0 = arith.constant 0 : i32
    %c0_i32_1 = arith.constant 0 : i32
    return %c0_i32, %c0_i32_0 : i32, i32
  }
  func.func @transform_7(%arg0: i32) -> (i32, i32) {
    %c0_i32 = arith.constant 0 : i32
    %c0_i32_0 = arith.constant 0 : i32
    %c0_i32_1 = arith.constant 0 : i32
    return %c0_i32, %c0_i32_0 : i32, i32
  }
  func.func @transform_8(%arg0: i32) -> (i32, i32) {
    %c0_i32 = arith.constant 0 : i32
    %c0_i32_0 = arith.constant 0 : i32
    %c0_i32_1 = arith.constant 0 : i32
    return %c0_i32, %c0_i32_0 : i32, i32
  }
  func.func @transform_9(%arg0: i32) -> (i32, i32) {
    %c0_i32 = arith.constant 0 : i32
    %c0_i32_0 = arith.constant 0 : i32
    return %arg0, %c0_i32 : i32, i32
  }
  func.func @transform_10(%arg0: i32) -> (i32, i32) {
    %c0_i32 = arith.constant 0 : i32
    %c0_i32_0 = arith.constant 0 : i32
    return %arg0, %c0_i32 : i32, i32
  }
}

</mosaic_0001>

<bundles_post_ra>
// kernel: autoencoder_forward.1
= control target key start
LH: loop header
LB: loop body
LE: loop exit
PB: predicated region body
PF: predicated region fallthrough
CT: control target
= control target key end

     0   :  { %16 = vsyncpa [#allocation3], 0  ;;  %v1074_v4 = vmov 0.0|0.0   ;;  %vm97_vm0 = vcmask 130048   ;;  %s1651_s0 = inlined_call_operand.vmem [shape: f32[8,400], index: 0, kind: input, shape index: {}]   ;;  %s1652_s1 = inlined_call_operand.vmem [shape: f32[400,128], index: 1, kind: input, shape index: {}]   ;;  %s1653_s2 = inlined_call_operand.vmem [shape: f32[1,128], index: 2, kind: input, shape index: {}]   ;;  %s1654_s3 = inlined_call_operand.vmem [shape: f32[128,128], index: 3, kind: input, shape index: {}]   ;;  %s1655_s4 = inlined_call_operand.vmem [shape: f32[1,128], index: 4, kind: input, shape index: {}]   ;;  %s1656_s5 = inlined_call_operand.vmem [shape: f32[128,128], index: 5, kind: input, shape index: {}]   ;;  %s1657_s6 = inlined_call_operand.vmem [shape: f32[1,128], index: 6, kind: input, shape index: {}]   ;;  %s1658_s7 = inlined_call_operand.vmem [shape: f32[128,400], index: 7, kind: input, shape index: {}]   ;;  %s1659_s8 = inlined_call_operand.vmem [shape: f32[1,400], index: 8, kind: input, shape index: {}]   ;;  %s1660_s9 = inlined_call_operand.hbm [shape: f32[8,25], index: 9, kind: output, shape index: {0}]   ;;  %s1661_s10 = inlined_call_operand.hbm [shape: f32[8,400], index: 10, kind: output, shape index: {1}]  }
   0x1   :  { %v56_v0 = vld [vmem:[%s1652_s1 + $0x80] sm:$0xff]  ;;  %v57_v1 = vld [vmem:[%s1652_s1 + $0x88] sm:$0xff]  ;;  %870 = vmatprep.subr.bf16.mxu1 %v1074_v4  ;;  %v58_v10 = vld [vmem:[%s1652_s1 + $0x90] sm:$0xff] }
   0x2   :  { %v40_v2 = vld [vmem:[%s1652_s1] sm:$0xff]  ;;  %v838_v3 = vpack.c.bf16 %v57_v1, %v56_v0  ;;  %v41_v5 = vld [vmem:[%s1652_s1 + $0x8] sm:$0xff]  ;;  %v59_v11 = vld [vmem:[%s1652_s1 + $0x98] sm:$0xff] }
   0x3   :  { %v72_v6 = vld [vmem:[%s1652_s1 + $0x100] sm:$0xff]  ;;  %v73_v7 = vld [vmem:[%s1652_s1 + $0x108] sm:$0xff]  ;;  %v840_v8 = vpack.c.bf16 %v41_v5, %v40_v2  ;;  %v42_v12 = vld [vmem:[%s1652_s1 + $0x10] sm:$0xff]  ;;  %v842_v13 = vpack.c.bf16 %v59_v11, %v58_v10 }
   0x4   :  { %v871_v9 = vpack.c.bf16 %v73_v7, %v72_v6  ;;  %839 = vmatprep.subr.bf16.mxu0 %v838_v3  ;;  %v43_v14 = vld [vmem:[%s1652_s1 + $0x18] sm:$0xff]  ;;  %v74_v15 = vld [vmem:[%s1652_s1 + $0x110] sm:$0xff]  ;;  %v60_v19 = vld [vmem:[%s1652_s1 + $0xa0] sm:$0xff] }
   0x5   :  { %v75_v16 = vld [vmem:[%s1652_s1 + $0x118] sm:$0xff]  ;;  %841 = vmatpush3.bf16.msra.mxu0 %v840_v8  ;;  %v844_v17 = vpack.c.bf16 %v43_v14, %v42_v12  ;;  %v61_v20 = vld [vmem:[%s1652_s1 + $0xa8] sm:$0xff]  ;;  %v44_v21 = vld [vmem:[%s1652_s1 + $0x20] sm:$0xff] }
   0x6   :  { %872 = vmatpush1.bf16.msra.mxu1 %v871_v9  ;;  %v874_v18 = vpack.c.bf16 %v75_v16, %v74_v15  ;;  %843 = vmatprep.subr.bf16.mxu0 %v842_v13  ;;  %v846_v22 = vpack.c.bf16 %v61_v20, %v60_v19  ;;  %v45_v23 = vld [vmem:[%s1652_s1 + $0x28] sm:$0xff]  ;;  %v76_v24 = vld [vmem:[%s1652_s1 + $0x120] sm:$0xff]  ;;  %v62_v26 = vld [vmem:[%s1652_s1 + $0xb0] sm:$0xff] }
   0x7   :  { %873 = vmatprep.subr.bf16.mxu1 %v1074_v4  ;;  %v77_v25 = vld [vmem:[%s1652_s1 + $0x128] sm:$0xff]  ;;  %v63_v27 = vld [vmem:[%s1652_s1 + $0xb8] sm:$0xff]  ;;  %v848_v28 = vpack.c.bf16 %v45_v23, %v44_v21  ;;  %v46_v30 = vld [vmem:[%s1652_s1 + $0x30] sm:$0xff] }
   0x8   :  { %v877_v29 = vpack.c.bf16 %v77_v25, %v76_v24  ;;  %v850_v31 = vpack.c.bf16 %v63_v27, %v62_v26  ;;  %v47_v32 = vld [vmem:[%s1652_s1 + $0x38] sm:$0xff]  ;;  %v78_v33 = vld [vmem:[%s1652_s1 + $0x130] sm:$0xff]  ;;  %v64_v35 = vld [vmem:[%s1652_s1 + $0xc0] sm:$0xff] }
   0x9   :  { %845 = vmatpush3.bf16.msra.mxu0 %v844_v17  ;;  %v79_v34 = vld [vmem:[%s1652_s1 + $0x138] sm:$0xff]  ;;  %v65_v36 = vld [vmem:[%s1652_s1 + $0xc8] sm:$0xff]  ;;  %v852_v37 = vpack.c.bf16 %v47_v32, %v46_v30  ;;  %v48_v39 = vld [vmem:[%s1652_s1 + $0x40] sm:$0xff] }
   0xa   :  { %875 = vmatpush1.bf16.msra.mxu1 %v874_v18  ;;  %847 = vmatprep.subr.bf16.mxu0 %v846_v22  ;;  %v880_v38 = vpack.c.bf16 %v79_v34, %v78_v33  ;;  %v854_v40 = vpack.c.bf16 %v65_v36, %v64_v35  ;;  %v49_v41 = vld [vmem:[%s1652_s1 + $0x48] sm:$0xff]  ;;  %v80_v42 = vld [vmem:[%s1652_s1 + $0x140] sm:$0xff]  ;;  %v66_v44 = vld [vmem:[%s1652_s1 + $0xd0] sm:$0xff] }
   0xb   :  { %876 = vmatprep.subr.bf16.mxu1 %v1074_v4  ;;  %v81_v43 = vld [vmem:[%s1652_s1 + $0x148] sm:$0xff]  ;;  %v67_v45 = vld [vmem:[%s1652_s1 + $0xd8] sm:$0xff]  ;;  %v856_v46 = vpack.c.bf16 %v49_v41, %v48_v39  ;;  %v50_v48 = vld [vmem:[%s1652_s1 + $0x50] sm:$0xff] }
   0xc   :  { %v883_v47 = vpack.c.bf16 %v81_v43, %v80_v42  ;;  %v51_v49 = vld [vmem:[%s1652_s1 + $0x58] sm:$0xff]  ;;  %v37_v50 = vld [vmem:[%s1651_s0 + $0x8] sm:$0xff]  ;;  %v858_v51 = vpack.c.bf16 %v67_v45, %v66_v44  ;;  %v82_v52 = vld [vmem:[%s1652_s1 + $0x150] sm:$0xff] }
   0xd   :  { %849 = vmatpush3.bf16.msra.mxu0 %v848_v28  ;;  %v83_v53 = vld [vmem:[%s1652_s1 + $0x158] sm:$0xff]  ;;  %v68_v55 = vld [vmem:[%s1652_s1 + $0xe0] sm:$0xff]  ;;  %v69_v56 = vld [vmem:[%s1652_s1 + $0xe8] sm:$0xff]  ;;  %165 = vmatprep.mubr.f32.mxu0 %v37_v50  ;;  %v860_v57 = vpack.c.bf16 %v51_v49, %v50_v48 }
   0xe   :  { %878 = vmatpush1.bf16.msra.mxu1 %v877_v29  ;;  %851 = vmatprep.subr.bf16.mxu0 %v850_v31  ;;  %v39_v54 = vld [vmem:[%s1651_s0 + $0x18] sm:$0xff]  ;;  %v886_v58 = vpack.c.bf16 %v83_v53, %v82_v52  ;;  %v52_v59 = vld [vmem:[%s1652_s1 + $0x60] sm:$0xff] }
   0xf   :  { %879 = vmatprep.subr.bf16.mxu1 %v1074_v4  ;;  %696 = vmatprep.mubr.msk.f32.mxu1 %vm97_vm0, %v39_v54 }
  0x11   :  { %853 = vmatpush3.bf16.msra.mxu0 %v852_v37 }
  0x12   :  { %881 = vmatpush1.bf16.msra.mxu1 %v880_v38  ;;  %855 = vmatprep.subr.bf16.mxu0 %v854_v40 }
  0x13   :  { %882 = vmatprep.subr.bf16.mxu1 %v1074_v4 }
  0x15   :  { %857 = vmatpush3.bf16.msra.mxu0 %v856_v46 }
  0x16   :  { %884 = vmatpush1.bf16.msra.mxu1 %v883_v47 }
  0x17   :  { %17 = vsyncpa [#allocation5], 0  ;;  %859 = vmatprep.subr.bf16.mxu0 %v858_v51  ;;  %885 = vmatprep.subr.bf16.mxu1 %v1074_v4  ;;  %v862_v60 = vpack.c.bf16 %v69_v56, %v68_v55  ;;  %v53_v61 = vld [vmem:[%s1652_s1 + $0x68] sm:$0xff]  ;;  %v84_v62 = vld [vmem:[%s1652_s1 + $0x160] sm:$0xff]  ;;  %vm1075_vm1 = vmmov 0   ;;  %v1076_v40 = vmov 0.0  }
  0x18   :  { %v85_v63 = vld [vmem:[%s1652_s1 + $0x168] sm:$0xff]  ;;  %v70_v0 = vld [vmem:[%s1652_s1 + $0xf0] sm:$0xff]  ;;  %v71_v1 = vld [vmem:[%s1652_s1 + $0xf8] sm:$0xff]  ;;  %v864_v2 = vpack.c.bf16 %v53_v61, %v52_v59  ;;  %vm335_vm2 = vcmask 203776   ;;  %s1077_s22 = smov [#allocation2]  }
  0x19   :  { %861 = vmatpush3.bf16.msra.mxu0 %v860_v57  ;;  %v889_v3 = vpack.c.bf16 %v85_v63, %v84_v62  ;;  %v54_v5 = vld [vmem:[%s1652_s1 + $0x70] sm:$0xff]  ;;  %v866_v6 = vpack.c.bf16 %v71_v1, %v70_v0  ;;  %v55_v7 = vld [vmem:[%s1652_s1 + $0x78] sm:$0xff]  ;;  %v88_v12 = vld [vmem:[%s1652_s1 + $0x180] sm:$0xff] }
  0x1a   :  { %887 = vmatpush1.bf16.msra.mxu1 %v886_v58  ;;  %863 = vmatprep.subr.bf16.mxu0 %v862_v60  ;;  %v86_v8 = vld [vmem:[%s1652_s1 + $0x170] sm:$0xff]  ;;  %v87_v9 = vld [vmem:[%s1652_s1 + $0x178] sm:$0xff]  ;;  %v868_v10 = vpack.c.bf16 %v55_v7, %v54_v5  ;;  %v89_v13 = vld [vmem:[%s1652_s1 + $0x188] sm:$0xff]  ;;  %s673_s1 = sshll.u32 %s1077_s22, 4  ;;  %s674_s1 = int_to_ptr.vmem [resolvable:$true] %s673_s1 }
  0x1b   :  { %888 = vmatprep.subr.bf16.mxu1 %v1074_v4  ;;  %v892_v11 = vpack.c.bf16 %v87_v9, %v86_v8  ;;  %v242_v14 = vld [vmem:[%s1654_s3] sm:$0xff]  ;;  %v243_v15 = vld [vmem:[%s1654_s3 + $0x8] sm:$0xff]  ;;  %v895_v17 = vpack.c.bf16 %v89_v13, %v88_v12  ;;  %v244_v19 = vld [vmem:[%s1654_s3 + $0x10] sm:$0xff]  ;;  %p1031_p1 = scmp.lt.s32.totalorder %s674_s1, %s674_s1 }
  0x1c   :  { %v36_v16 = vld [vmem:[%s1651_s0] sm:$0xff]  ;;  %v898_v18 = vpack.c.bf16 %v243_v15, %v242_v14  ;;  %v245_v20 = vld [vmem:[%s1654_s3 + $0x18] sm:$0xff]  ;;  %v38_v21 = vld [vmem:[%s1651_s0 + $0x10] sm:$0xff] }
  0x1d   :  { %865 = vmatpush3.bf16.msra.mxu0 %v864_v2  ;;  %v901_v22 = vpack.c.bf16 %v245_v20, %v244_v19  ;;  %v246_v23 = vld [vmem:[%s1654_s3 + $0x20] sm:$0xff]  ;;  %v247_v24 = vld [vmem:[%s1654_s3 + $0x28] sm:$0xff]  ;;  %v248_v26 = vld [vmem:[%s1654_s3 + $0x30] sm:$0xff] }
  0x1e   :  { %890 = vmatpush1.bf16.msra.mxu1 %v889_v3  ;;  %867 = vmatprep.subr.bf16.mxu0 %v866_v6  ;;  %v904_v25 = vpack.c.bf16 %v247_v24, %v246_v23  ;;  %v249_v27 = vld [vmem:[%s1654_s3 + $0x38] sm:$0xff]  ;;  %v250_v29 = vld [vmem:[%s1654_s3 + $0x40] sm:$0xff]  ;;  %v251_v30 = vld [vmem:[%s1654_s3 + $0x48] sm:$0xff] }
  0x1f   :  { %891 = vmatprep.subr.bf16.mxu1 %v1074_v4  ;;  %v907_v28 = vpack.c.bf16 %v249_v27, %v248_v26  ;;  %v910_v31 = vpack.c.bf16 %v251_v30, %v250_v29  ;;  %v252_v32 = vld [vmem:[%s1654_s3 + $0x50] sm:$0xff]  ;;  %v253_v33 = vld [vmem:[%s1654_s3 + $0x58] sm:$0xff]  ;;  %v254_v35 = vld [vmem:[%s1654_s3 + $0x60] sm:$0xff] }
  0x20   :  { %v913_v34 = vpack.c.bf16 %v253_v33, %v252_v32  ;;  %v255_v36 = vld [vmem:[%s1654_s3 + $0x68] sm:$0xff]  ;;  %v256_v38 = vld [vmem:[%s1654_s3 + $0x70] sm:$0xff]  ;;  %v257_v39 = vld [vmem:[%s1654_s3 + $0x78] sm:$0xff] }
  0x21   :  { %869 = vmatpush3.bf16.msra.mxu0 %v868_v10  ;;  %v916_v37 = vpack.c.bf16 %v255_v36, %v254_v35  ;;  %v919_v41 = vpack.c.bf16 %v257_v39, %v256_v38  ;;  %v337_v42 = vld [vmem:[%s1656_s5] sm:$0xff]  ;;  %v338_v43 = vld [vmem:[%s1656_s5 + $0x8] sm:$0xff]  ;;  %v339_v44 = vld [vmem:[%s1656_s5 + $0x10] sm:$0xff] }
  0x22   :  { %893 = vmatpush1.bf16.msra.mxu1 %v892_v11  ;;  %897 = vmatprep.subr.bf16.mxu0 %v1074_v4  ;;  %v922_v45 = vpack.c.bf16 %v338_v43, %v337_v42  ;;  %v340_v46 = vld [vmem:[%s1656_s5 + $0x18] sm:$0xff]  ;;  %v341_v48 = vld [vmem:[%s1656_s5 + $0x20] sm:$0xff]  ;;  %v342_v49 = vld [vmem:[%s1656_s5 + $0x28] sm:$0xff] }
  0x23   :  { %894 = vmatprep.subr.bf16.mxu1 %v1074_v4  ;;  %v925_v47 = vpack.c.bf16 %v340_v46, %v339_v44  ;;  %v928_v50 = vpack.c.bf16 %v342_v49, %v341_v48  ;;  %v343_v51 = vld [vmem:[%s1656_s5 + $0x30] sm:$0xff]  ;;  %v344_v52 = vld [vmem:[%s1656_s5 + $0x38] sm:$0xff]  ;;  %v345_v54 = vld [vmem:[%s1656_s5 + $0x40] sm:$0xff] }
  0x24   :  { %166 = vmatmul.mubr.f32.vlgmr.msra.gmra.mrb[0].mxu0 %v36_v16  ;;  %v931_v53 = vpack.c.bf16 %v344_v52, %v343_v51  ;;  %v346_v55 = vld [vmem:[%s1656_s5 + $0x48] sm:$0xff]  ;;  %v347_v57 = vld [vmem:[%s1656_s5 + $0x50] sm:$0xff]  ;;  %v348_v58 = vld [vmem:[%s1656_s5 + $0x58] sm:$0xff] }
  0x25   :  { %899 = vmatpush3.bf16.msra.mxu0 %v898_v18  ;;  %800 = vmatprep.mubr.msk.f32.mxu0 %vm1075_vm1, %v1076_v40  ;;  %v934_v56 = vpack.c.bf16 %v346_v55, %v345_v54  ;;  %v937_v59 = vpack.c.bf16 %v348_v58, %v347_v57  ;;  %v349_v60 = vld [vmem:[%s1656_s5 + $0x60] sm:$0xff]  ;;  %v350_v61 = vld [vmem:[%s1656_s5 + $0x68] sm:$0xff]  ;;  %v352_v9 = vld [vmem:[%s1656_s5 + $0x78] sm:$0xff] }
  0x26   :  { %896 = vmatpush1.bf16.msra.mxu1 %v895_v17  ;;  %900 = vmatprep.subr.bf16.mxu0 %v1074_v4  ;;  %v940_v62 = vpack.c.bf16 %v350_v61, %v349_v60  ;;  %v695_v1 = vld [vmem:[%s1653_s2] ss:$0 sm:$0xff]  ;;  %v432_v11 = vld [vmem:[%s1658_s7 + $0x8] sm:$0xff]  ;;  %v434_v13 = vld [vmem:[%s1658_s7 + $0x18] sm:$0xff] }
  0x27   :  { %921 = vmatprep.subr.bf16.mxu1 %v1074_v4  ;;  %v436_v12 = vld [vmem:[%s1658_s7 + $0x28] sm:$0xff]  ;;  %v438_v15 = vld [vmem:[%s1658_s7 + $0x38] sm:$0xff]  ;;  %v431_v16 = vld [vmem:[%s1658_s7] sm:$0xff] }
  0x28   :  { %v945_v14 = vpack.c.bf16 %v436_v12, %v432_v11  ;;  %v435_v17 = vld [vmem:[%s1658_s7 + $0x20] sm:$0xff]  ;;  %v977_v18 = vpack.c.bf16 %v438_v15, %v434_v13  ;;  %v440_v20 = vld [vmem:[%s1658_s7 + $0x48] sm:$0xff]  ;;  %v437_v46 = vld [vmem:[%s1658_s7 + $0x30] sm:$0xff] }
  0x29   :  { %236 = vmatmul.mubr.f32.vlgmr.msra.gmra.mrb[0].mxu1 %v38_v21  ;;  %902 = vmatpush3.bf16.msra.mxu0 %v901_v22  ;;  %v947_v19 = vpack.c.bf16 %v435_v17, %v431_v16  ;;  %v444_v21 = vld [vmem:[%s1658_s7 + $0x68] sm:$0xff]  ;;  %v439_v23 = vld [vmem:[%s1658_s7 + $0x40] sm:$0xff]  ;;  %v442_v48 = vld [vmem:[%s1658_s7 + $0x58] sm:$0xff] }
  0x2a   :  { %903 = vmatprep.subr.bf16.mxu0 %v1074_v4  ;;  %835 = vmatprep.mubr.msk.f32.mxu1 %vm1075_vm1, %v1076_v40  ;;  %v949_v22 = vpack.c.bf16 %v444_v21, %v440_v20  ;;  %v443_v24 = vld [vmem:[%s1658_s7 + $0x60] sm:$0xff]  ;;  %v448_v26 = vld [vmem:[%s1658_s7 + $0x88] sm:$0xff]  ;;  %v446_v49 = vld [vmem:[%s1658_s7 + $0x78] sm:$0xff] }
  0x2b   :  { %923 = vmatpush3.bf16.msra.mxu1 %v922_v45  ;;  %v452_v27 = vld [vmem:[%s1658_s7 + $0xa8] sm:$0xff]  ;;  %v447_v29 = vld [vmem:[%s1658_s7 + $0x80] sm:$0xff]  ;;  %v433_v45 = vld [vmem:[%s1658_s7 + $0x10] sm:$0xff]  ;;  %v981_v54 = vpack.c.bf16 %v446_v49, %v442_v48 }
  0x2c   :  { %924 = vmatprep.subr.bf16.mxu1 %v1074_v4  ;;  %v451_v30 = vld [vmem:[%s1658_s7 + $0xa0] sm:$0xff]  ;;  %v456_v32 = vld [vmem:[%s1658_s7 + $0xc8] sm:$0xff]  ;;  %v979_v51 = vpack.c.bf16 %v437_v46, %v433_v45  ;;  %v441_v55 = vld [vmem:[%s1658_s7 + $0x50] sm:$0xff] }
  0x2d   :  { %905 = vmatpush3.bf16.msra.mxu0 %v904_v25  ;;  %v951_v25 = vpack.c.bf16 %v443_v24, %v439_v23  ;;  %v460_v33 = vld [vmem:[%s1658_s7 + $0xe8] sm:$0xff]  ;;  %v455_v35 = vld [vmem:[%s1658_s7 + $0xc0] sm:$0xff]  ;;  %v450_v57 = vld [vmem:[%s1658_s7 + $0x98] sm:$0xff] }
  0x2e   :  { %906 = vmatprep.subr.bf16.mxu0 %v1074_v4  ;;  %v459_v36 = vld [vmem:[%s1658_s7 + $0xe0] sm:$0xff]  ;;  %v464_v38 = vld [vmem:[%s1658_s7 + $0x108] sm:$0xff]  ;;  %v454_v58 = vld [vmem:[%s1658_s7 + $0xb8] sm:$0xff] }
  0x2f   :  { %926 = vmatpush3.bf16.msra.mxu1 %v925_v47  ;;  %v468_v39 = vld [vmem:[%s1658_s7 + $0x128] sm:$0xff]  ;;  %v463_v42 = vld [vmem:[%s1658_s7 + $0x100] sm:$0xff]  ;;  %v985_v60 = vpack.c.bf16 %v454_v58, %v450_v57  ;;  %v449_v61 = vld [vmem:[%s1658_s7 + $0x90] sm:$0xff] }
  0x30   :  { %927 = vmatprep.subr.bf16.mxu1 %v1074_v4  ;;  %v467_v43 = vld [vmem:[%s1658_s7 + $0x120] sm:$0xff]  ;;  %v472_v11 = vld [vmem:[%s1658_s7 + $0x148] sm:$0xff]  ;;  %v474_v13 = vld [vmem:[%s1658_s7 + $0x158] sm:$0xff] }
  0x31   :  { %908 = vmatpush3.bf16.msra.mxu0 %v907_v28  ;;  %v953_v28 = vpack.c.bf16 %v452_v27, %v448_v26  ;;  %v963_v44 = vpack.c.bf16 %v467_v43, %v463_v42  ;;  %v697_v47 = vld [vmem:[%s1655_s4] ss:$0 sm:$0xff]  ;;  %v476_v12 = vld [vmem:[%s1658_s7 + $0x168] sm:$0xff]  ;;  %v478_v15 = vld [vmem:[%s1658_s7 + $0x178] sm:$0xff] }
  0x32   :  { %909 = vmatprep.subr.bf16.mxu0 %v1074_v4  ;;  %v471_v16 = vld [vmem:[%s1658_s7 + $0x140] sm:$0xff]  ;;  %v473_v20 = vld [vmem:[%s1658_s7 + $0x150] sm:$0xff]  ;;  %v480_v23 = vld [vmem:[%s1658_s7 + $0x188] sm:$0xff] }
  0x33   :  { %929 = vmatpush3.bf16.msra.mxu1 %v928_v50  ;;  %v475_v17 = vld [vmem:[%s1658_s7 + $0x160] sm:$0xff]  ;;  %v477_v21 = vld [vmem:[%s1658_s7 + $0x170] sm:$0xff]  ;;  %v484_v24 = vld [vmem:[%s1658_s7 + $0x1a8] sm:$0xff] }
  0x34   :  { %930 = vmatprep.subr.bf16.mxu1 %v1074_v4  ;;  %v969_v26 = vpack.c.bf16 %v484_v24, %v480_v23  ;;  %v486_v27 = vld [vmem:[%s1658_s7 + $0x1b8] sm:$0xff]  ;;  %v487_v42 = vld [vmem:[%s1658_s7 + $0x1c0] sm:$0xff]  ;;  %v493_v46 = vld [vmem:[%s1658_s7 + $0x1f0] sm:$0xff] }
  0x35   :  { %911 = vmatpush3.bf16.msra.mxu0 %v910_v31  ;;  %v955_v31 = vpack.c.bf16 %v451_v30, %v447_v29  ;;  %v483_v29 = vld [vmem:[%s1658_s7 + $0x1a0] sm:$0xff] }
  0x36   :  { %912 = vmatprep.subr.bf16.mxu0 %v1074_v4  ;;  %v491_v43 = vld [vmem:[%s1658_s7 + $0x1e0] sm:$0xff] }
  0x37   :  { %932 = vmatpush3.bf16.msra.mxu1 %v931_v53  ;;  %v975_v45 = vpack.c.bf16 %v491_v43, %v487_v42  ;;  %v698_v48 = vld [vmem:[%s1657_s6] ss:$0 sm:$0xff] }
  0x38   :  { %933 = vmatprep.subr.bf16.mxu1 %v1074_v4 }
  0x39   :  { %914 = vmatpush3.bf16.msra.mxu0 %v913_v34  ;;  %v957_v34 = vpack.c.bf16 %v460_v33, %v456_v32  ;;  %v481_v32 = vld [vmem:[%s1658_s7 + $0x190] sm:$0xff] }
  0x3a   :  { %915 = vmatprep.subr.bf16.mxu0 %v1074_v4  ;;  %v485_v33 = vld [vmem:[%s1658_s7 + $0x1b0] sm:$0xff] }
  0x3b   :  { %935 = vmatpush3.bf16.msra.mxu1 %v934_v56  ;;  %v445_v56 = vld [vmem:[%s1658_s7 + $0x70] sm:$0xff] }
  0x3c   :  { %936 = vmatprep.subr.bf16.mxu1 %v1074_v4 }
  0x3d   :  { %917 = vmatpush3.bf16.msra.mxu0 %v916_v37  ;;  %v959_v37 = vpack.c.bf16 %v459_v36, %v455_v35  ;;  %v1003_v35 = vpack.c.bf16 %v485_v33, %v481_v32  ;;  %v492_v36 = vld [vmem:[%s1658_s7 + $0x1e8] sm:$0xff] }
  0x3e   :  { %918 = vmatprep.subr.bf16.mxu0 %v1074_v4 }
  0x3f   :  { %938 = vmatpush3.bf16.msra.mxu1 %v937_v59  ;;  %v983_v59 = vpack.c.bf16 %v445_v56, %v441_v55 }
  0x40   :  { %939 = vmatprep.subr.bf16.mxu1 %v1074_v4 }
  0x41   :  { %920 = vmatpush3.bf16.msra.mxu0 %v919_v41  ;;  %v961_v41 = vpack.c.bf16 %v468_v39, %v464_v38  ;;  %v494_v38 = vld [vmem:[%s1658_s7 + $0x1f8] sm:$0xff] }
  0x42   :  { %946 = vmatprep.subr.bf16.mxu0 %v945_v14  ;;  %v965_v14 = vpack.c.bf16 %v476_v12, %v472_v11 }
  0x43   :  { %941 = vmatpush3.bf16.msra.mxu1 %v940_v62  ;;  %v453_v62 = vld [vmem:[%s1658_s7 + $0xb0] sm:$0xff] }
  0x44   :  { %942 = vmatprep.subr.bf16.mxu1 %v1074_v4  ;;  %v351_v4 = vld [vmem:[%s1656_s5 + $0x70] sm:$0xff] }
  0x45   :  { %v943_v10 = vpack.c.bf16 %v352_v9, %v351_v4  ;;  %v465_v4 = vld [vmem:[%s1658_s7 + $0x110] sm:$0xff] }
  0x46   :  { %v469_v9 = vld [vmem:[%s1658_s7 + $0x130] sm:$0xff] }
  0x47   :  { %944 = vmatpush3.bf16.msra.mxu1 %v943_v10  ;;  %v995_v10 = vpack.c.bf16 %v469_v9, %v465_v4 }
  0x48   :  { %978 = vmatprep.subr.bf16.mxu1 %v977_v18  ;;  %v997_v18 = vpack.c.bf16 %v478_v15, %v474_v13 }
  0xf7   :  { %v731_v63 = vpop.f32.mrb[0].mxu0 }
  0xf8   :  { %v732_v0 = vpop.f32.mrb[1].mxu0 }
  0xf9   :  { %v733_v2 = vadd.f32 %v732_v0, %v731_v63  ;;  %v458_v63 = vld [vmem:[%s1658_s7 + $0xd8] sm:$0xff] }
  0xfa   :  { %v462_v0 = vld [vmem:[%s1658_s7 + $0xf8] sm:$0xff] }
  0xfb   :  { %v168_v3 = vadd.f32 %v733_v2, %v695_v1  ;;  %v989_v1 = vpack.c.bf16 %v462_v0, %v458_v63  ;;  %v457_v2 = vld [vmem:[%s1658_s7 + $0xd0] sm:$0xff] }
  0xfc   :  { %v237_v5 = vpop.f32.mrb[0].mxu1 }
  0xfd   :  { %v239_v6 = vpop.f32.mrb[1].mxu1  ;;  %v238_v7 = vadd.f32 %v237_v5, %v168_v3  ;;  %v461_v3 = vld [vmem:[%s1658_s7 + $0xf0] sm:$0xff]  ;;  %v466_v5 = vld [vmem:[%s1658_s7 + $0x118] sm:$0xff] }
  0xfe   :  { %v470_v6 = vld [vmem:[%s1658_s7 + $0x138] sm:$0xff] }
  0xff   :  { %1014 = vtanh.f32 %v238_v7  ;;  %v991_v7 = vpack.c.bf16 %v461_v3, %v457_v2 }
 0x109   :  { %v1015_v8 = vpop.eup %1014 }
 0x10a   :  { %801 = vmatmul.mubr.f32.vlgmr.msra.gmra.mrb[2].mxu0 %v1015_v8  ;;  %v993_v8 = vpack.c.bf16 %v470_v6, %v466_v5 }
 0x10b   :  { %581 = vmatprep.mubr.f32.mxu0 %v1076_v40  ;;  %948 = vmatpush1.bf16.msra.mxu0 %v947_v19  ;;  %v967_v19 = vpack.c.bf16 %v475_v17, %v471_v16 }
 0x10c   :  { %950 = vmatprep.subr.bf16.mxu0 %v949_v22  ;;  %v999_v22 = vpack.c.bf16 %v477_v21, %v473_v20 }
 0x10f   :  { %952 = vmatpush1.bf16.msra.mxu0 %v951_v25  ;;  %v482_v25 = vld [vmem:[%s1658_s7 + $0x198] sm:$0xff] }
 0x110   :  { %954 = vmatprep.subr.bf16.mxu0 %v953_v28  ;;  %v479_v28 = vld [vmem:[%s1658_s7 + $0x180] sm:$0xff]  ;;  %v1001_v30 = vpack.c.bf16 %v486_v27, %v482_v25 }
 0x113   :  { %956 = vmatpush1.bf16.msra.mxu0 %v955_v31  ;;  %v971_v31 = vpack.c.bf16 %v483_v29, %v479_v28 }
 0x114   :  { %958 = vmatprep.subr.bf16.mxu0 %v957_v34  ;;  %v488_v34 = vld [vmem:[%s1658_s7 + $0x1c8] sm:$0xff] }
 0x115   :  { %v973_v39 = vpack.c.bf16 %v492_v36, %v488_v34 }
 0x117   :  { %960 = vmatpush1.bf16.msra.mxu0 %v959_v37  ;;  %v490_v37 = vld [vmem:[%s1658_s7 + $0x1d8] sm:$0xff] }
 0x118   :  { %962 = vmatprep.subr.bf16.mxu0 %v961_v41  ;;  %v1005_v41 = vpack.c.bf16 %v494_v38, %v490_v37 }
 0x11b   :  { %964 = vmatpush1.bf16.msra.mxu0 %v963_v44  ;;  %v489_v44 = vld [vmem:[%s1658_s7 + $0x1d0] sm:$0xff]  ;;  %s1026_s7 = scalar_lea.vmem %s674_s1, 128 }
 0x11c   :  { %966 = vmatprep.subr.bf16.mxu0 %v965_v14  ;;  %p1027_p0 = scmp.ne.s32.totalorder %s674_s1, %s1026_s7  ;;  %p1032_p2 = scmp.lt.s32.totalorder %s1026_s7, %s1026_s7 }
 0x11e   :  { %p1033_p3 = por %p1032_p2, %p1031_p1 }
 0x11f   :  { %968 = vmatpush1.bf16.msra.mxu0 %v967_v19 }
 0x120   :  { %970 = vmatprep.subr.bf16.mxu0 %v969_v26  ;;  %p1034_p4 = pnand %p1033_p3, %p1027_p0 }
 0x123   :  { %972 = vmatpush1.bf16.msra.mxu0 %v971_v31 }
 0x124   :  { %974 = vmatprep.subr.bf16.mxu0 %v973_v39 }
 0x127   :  { %976 = vmatpush1.bf16.msra.mxu0 %v975_v45 }
 0x1dd   :  { %v331_v50 = vpop.f32.mrb[2].mxu0 }
 0x1de   :  { %v332_v52 = vadd.f32 %v697_v47, %v331_v50  ;;  %v802_v53 = vpop.f32.mrb[3].mxu0  ;;  %v1007_v47 = vpack.c.bf16 %v493_v46, %v489_v44 }
 0x1e0   :  { %836 = vmatmul.mubr.f32.vlgmr.msra.gmra.mrb[2].mxu1 %v332_v52  ;;  %336 = vst.msk [vmem:[#allocation2] sm:$0xff] %vm335_vm2, %v332_v52 }
 0x1e1   :  { %980 = vmatpush1.bf16.msra.mxu1 %v979_v51  ;;  %652 = vmatprep.mubr.f32.mxu1 %v1076_v40  ;;  %v987_v40 = vpack.c.bf16 %v453_v62, %v449_v61 }
 0x1e2   :  { %982 = vmatprep.subr.bf16.mxu1 %v981_v54 }
 0x1e5   :  { %984 = vmatpush1.bf16.msra.mxu1 %v983_v59 }
 0x1e6   :  { %986 = vmatprep.subr.bf16.mxu1 %v985_v60 }
 0x1e9   :  { %988 = vmatpush1.bf16.msra.mxu1 %v987_v40 }
 0x1ea   :  { %990 = vmatprep.subr.bf16.mxu1 %v989_v1 }
 0x1ed   :  { %992 = vmatpush1.bf16.msra.mxu1 %v991_v7 }
 0x1ee   :  { %994 = vmatprep.subr.bf16.mxu1 %v993_v8 }
 0x1f1   :  { %996 = vmatpush1.bf16.msra.mxu1 %v995_v10 }
 0x1f2   :  { %998 = vmatprep.subr.bf16.mxu1 %v997_v18 }
 0x1f5   :  { %1000 = vmatpush1.bf16.msra.mxu1 %v999_v22 }
 0x1f6   :  { %1002 = vmatprep.subr.bf16.mxu1 %v1001_v30 }
 0x1f9   :  { %1004 = vmatpush1.bf16.msra.mxu1 %v1003_v35 }
 0x1fa   :  { %1006 = vmatprep.subr.bf16.mxu1 %v1005_v41 }
 0x1fd   :  { %1008 = vmatpush1.bf16.msra.mxu1 %v1007_v47 }
 0x2b3   :  { %v426_v49 = vpop.f32.mrb[2].mxu1 }
 0x2b4   :  { %v427_v50 = vadd.f32 %v698_v48, %v426_v49  ;;  %v837_v51 = vpop.f32.mrb[3].mxu1 }
 0x2b6   :  { %1016 = vtanh.f32 %v427_v50 }
 0x2c0   :  { %v1017_v52 = vpop.eup %1016 }
 0x2c1   :  { %582 = vmatmul.mubr.f32.vlgmr.msra.gmra.mrb[4].mxu0 %v1017_v52  ;;  %653 = vmatmul.mubr.f32.vlgmr.msra.gmra.mrb[4].mxu1 %v1017_v52 }
 0x2c2   :  { %1037 = shalt.err (!%p1034_p4)
}
 0x2c3   :  { %s1038_s6 = scalar_lea.hbm %s1660_s9, 128 }
 0x2c4   :  { %p1039_p5 = scmp.ne.s32.totalorder %s1660_s9, %s1038_s6  ;;  %p1042_p6 = scmp.lt.u32.totalorder %s1038_s6, %s1660_s9 }
 0x2c6   :  { %p1044_p7 = pnand %p1042_p6, %p1039_p5 }
 0x2c8   :  { %1047 = shalt.err (!%p1044_p7)
}
 0x2c9   :  { %676 = dma.vmem_to_hbm [thread:$0]  %s674_s1, 128, %s1660_s9, [#allocation3]   ;;  %v497_v53 = vlaneseq  ;;  %v495_v57 = vld [vmem:[%s1659_s8] sm:$0xf] }
 0x2ca   :  { %s1078_s9 = smov [#allocation4]  }
 0x2cb   :  { %v498_v54 = vshrl.u32 %v497_v53, 7  ;;  %s683_s8 = sshll.u32 %s1078_s9, 4  ;;  %s684_s8 = int_to_ptr.vmem [resolvable:$true] %s683_s8 }
 0x2cc   :  { %s1048_s11 = scalar_lea.vmem %s684_s8, 512  ;;  %p1053_p9 = scmp.lt.s32.totalorder %s684_s8, %s684_s8 }
 0x2cd   :  { %v499_v55 = vsub.s32 0, %v498_v54  ;;  %v507_v56 = vsub.s32 2, %v498_v54  ;;  %v503_v58 = vsub.s32 1, %v498_v54  ;;  %v511_v59 = vsub.s32 3, %v498_v54  ;;  %p1049_p8 = scmp.ne.s32.totalorder %s684_s8, %s1048_s11  ;;  %p1054_p10 = scmp.lt.s32.totalorder %s1048_s11, %s1048_s11 }
 0x2cf   :  { %v500_v60 = vrot.slane %v495_v57, %v499_v55  ;;  %v508_v61 = vrot.slane %v495_v57, %v507_v56  ;;  %v504_v62 = vrot.slane %v495_v57, %v503_v58  ;;  %v512_v63 = vrot.slane %v495_v57, %v511_v59  ;;  %p1055_p11 = por %p1054_p10, %p1053_p9 }
 0x2d1   :  { %p1056_p12 = pnand %p1055_p11, %p1049_p8 }
 0x394   :  { %v583_v0 = vpop.f32.mrb[4].mxu0  ;;  %v654_v40 = vpop.f32.mrb[4].mxu1 }
 0x395   :  { %v584_v1 = vadd.f32 %v583_v0, %v500_v60  ;;  %v655_v2 = vadd.f32 %v654_v40, %v508_v61  ;;  %v585_v3 = vpop.f32.mrb[5].mxu0  ;;  %v656_v5 = vpop.f32.mrb[5].mxu1 }
 0x396   :  { %v586_v6 = vadd.f32 %v585_v3, %v504_v62  ;;  %v657_v7 = vadd.f32 %v656_v5, %v512_v63 }
 0x397   :  { %1018 = vtanh.f32 %v584_v1 }
 0x398   :  { %1020 = vtanh.f32 %v655_v2 }
 0x399   :  { %1022 = vtanh.f32 %v586_v6 }
 0x39a   :  { %1024 = vtanh.f32 %v657_v7 }
 0x3a1   :  { %v1019_v8 = vpop.eup %1018 }
 0x3a2   :  { %v1021_v4 = vpop.eup %1020  ;;  %663 = vst [vmem:[#allocation4] sm:$0xff] %v1019_v8 }
 0x3a3   :  { %v1023_v9 = vpop.eup %1022  ;;  %665 = vst [vmem:[#allocation4 + $0x10] sm:$0xff] %v1021_v4 }
 0x3a4   :  { %v1025_v10 = vpop.eup %1024  ;;  %664 = vst [vmem:[#allocation4 + $0x8] sm:$0xff] %v1023_v9 }
 0x3a5   :  { %666 = vst.msk [vmem:[#allocation4 + $0x18] sm:$0xff] %vm97_vm0, %v1025_v10 }
 0x3a6   :  { %1059 = shalt.err (!%p1056_p12)
}
 0x3a7   :  { %s1060_s3 = scalar_lea.hbm %s1661_s10, 512 }
 0x3a8   :  { %p1061_p13 = scmp.ne.s32.totalorder %s1661_s10, %s1060_s3  ;;  %p1064_p0 = scmp.lt.u32.totalorder %s1060_s3, %s1661_s10 }
 0x3aa   :  { %p1066_p1 = pnand %p1064_p0, %p1061_p13 }
 0x3ac   :  { %1069 = shalt.err (!%p1066_p1)
}
 0x3ad   :  { %686 = dma.vmem_to_hbm [thread:$0]  %s684_s8, 512, %s1661_s10, [#allocation5]  }
 0x3ae   :  { %1070 = dma.done.wait [#allocation3], 128  }
 0x3af   :  { %1071 = vsyncadd [#allocation3], 4294967168 }
 0x3b0   :  { %1072 = dma.done.wait [#allocation5], 512  }
 0x3b1   :  { %1073 = vsyncadd [#allocation5], 4294966784 }
 0x3b2   :  { %693 = vsyncpa [#allocation3], 1 }
 0x3b3   :  { %694 = vsyncpa [#allocation5], 1 }

</bundles_post_ra>
